<compile_context>
chip_gen: v6e
topology: v6e:2x2x1
jax: 0.10.0
libtpu: 0.0.40
codegen_flags: <defaults>
</compile_context>

<pallas_src>
import jax
import jax.numpy as jnp
from jax import lax
from jax.experimental import pallas as pl
from jax.experimental.pallas import tpu as pltpu


def _attention_kernel(q_ref, tft_ref, w_ref, weights_ref, scores_ref):
    # ctx^T = W_main @ text_feat^T : (D, T) x (T, L) -> (D, L)
    # Batch-independent; computed once and reused for all B query rows.
    ctx_t = lax.dot_general(
        w_ref[...],
        tft_ref[...],
        dimension_numbers=(((1,), (0,)), ((), ())),
        preferred_element_type=jnp.float32,
    )
    # scores = query @ ctx^T : (B, D) x (D, L) -> (B, L)
    scores = lax.dot_general(
        q_ref[...],
        ctx_t,
        dimension_numbers=(((1,), (0,)), ((), ())),
        preferred_element_type=jnp.float32,
    )
    scores_ref[...] = scores

    # Numerically-stable softmax along the last dim (query_len axis), f32.
    m = jnp.max(scores, axis=-1, keepdims=True)
    e = jnp.exp(scores - m)
    weights_ref[...] = e / jnp.sum(e, axis=-1, keepdims=True)


def attention_forward(query, text_feat, w_main):
    """query: (B, D); text_feat: (1, L, T); w_main: (D, T).

    Returns (attention_weights (B, 1, L), attention_scores (B, L)),
    matching the PyTorch module's forward.
    """
    B, D = query.shape
    L, T = text_feat.shape[1], text_feat.shape[2]
    # Pre-transpose in the wrapper (XLA) so both in-kernel matmuls are
    # standard contractions and the output L dim is lane-dense.
    tf_t = text_feat.reshape(L, T).T  # (T, L)

    # Whole problem fits in VMEM: no grid, full-array VMEM blocks, single
    # kernel invocation — minimal dispatch + no pipeline scaffolding.
    weights, scores = pl.pallas_call(
        _attention_kernel,
        out_shape=(
            jax.ShapeDtypeStruct((B, L), jnp.float32),
            jax.ShapeDtypeStruct((B, L), jnp.float32),
        ),
        in_specs=[
            pl.BlockSpec(memory_space=pltpu.MemorySpace.VMEM),
            pl.BlockSpec(memory_space=pltpu.MemorySpace.VMEM),
            pl.BlockSpec(memory_space=pltpu.MemorySpace.VMEM),
        ],
        out_specs=(
            pl.BlockSpec(memory_space=pltpu.MemorySpace.VMEM),
            pl.BlockSpec(memory_space=pltpu.MemorySpace.VMEM),
        ),
    )(query, tf_t, w_main)

    return weights.reshape(B, 1, L), scores


def _reference(query, text_feat, w_main):
    context = jnp.einsum("blt,dt->bld", text_feat, w_main)          # (1, L, D)
    context = jnp.broadcast_to(context, (query.shape[0],) + context.shape[1:])
    scores = jnp.einsum("bd,bld->bl", query, context)               # (B, L)
    weights = jax.nn.softmax(scores, axis=-1)
    return weights.reshape(query.shape[0], 1, -1), scores


if __name__ == "__main__":
    # Small, module-consistent shapes: dimensions=32, text_dim=48,
    # batch=2, query_len (number of text tokens)=8.
    B, D, T, L = 2, 32, 48, 8

    key = jax.random.PRNGKey(0)
    k_q, k_tf, k_wm, k_wo = jax.random.split(key, 4)

    query = jax.random.normal(k_q, (B, D), dtype=jnp.float32)
    text_feat = jax.random.normal(k_tf, (1, L, T), dtype=jnp.float32)
    # Deterministic parameter init (synthetic; no checkpoint load).
    w_main = jax.random.normal(k_wm, (D, T), dtype=jnp.float32) * 0.02
    # linear_out is defined in __init__ but unused in forward; kept for fidelity.
    w_linear_out = jax.random.normal(k_wo, (D, 2 * D), dtype=jnp.float32) * 0.02

    weights, scores = attention_forward(query, text_feat, w_main)
    jax.block_until_ready((weights, scores))

    ref_w, ref_s = _reference(query, text_feat, w_main)
    assert weights.shape == (B, 1, L)
    assert scores.shape == (B, L)
    # Matmul ordering now matches the reference; exact divide in softmax.
    assert jnp.allclose(scores, ref_s, atol=1e-5, rtol=1e-5)
    assert jnp.allclose(weights, ref_w, atol=1e-5, rtol=1e-5)

    print("KERNEL_OK")
</pallas_src>

<mosaic_0001>
module attributes {stable_mosaic.version = 11 : i64} {
  func.func @_attention_kernel(%arg0: memref<2x32xf32, #tpu.memory_space<vmem>>, %arg1: memref<48x8xf32, #tpu.memory_space<vmem>>, %arg2: memref<32x48xf32, #tpu.memory_space<vmem>>, %arg3: memref<2x8xf32, #tpu.memory_space<vmem>>, %arg4: memref<2x8xf32, #tpu.memory_space<vmem>>) attributes {dimension_semantics = [], scalar_prefetch = 0 : i64, scratch_operands = 0 : i64, tpu.core_type = #tpu.core_type<tc>} {
    %c0 = arith.constant 0 : index
    %c0_0 = arith.constant 0 : index
    %0 = vector.load %arg2[%c0, %c0_0] : memref<32x48xf32, #tpu.memory_space<vmem>>, vector<32x48xf32>
    %c0_1 = arith.constant 0 : index
    %c0_2 = arith.constant 0 : index
    %1 = vector.load %arg1[%c0_1, %c0_2] : memref<48x8xf32, #tpu.memory_space<vmem>>, vector<48x8xf32>
    %cst = arith.constant dense<0.000000e+00> : vector<32x8xf32>
    %2 = tpu.matmul %0, %1, %cst {dimension_numbers = #tpu.dot_dimension_numbers<[1], [0], [0], [1], [0, 0, 1, 1], [], []>} : vector<32x48xf32>, vector<48x8xf32>, vector<32x8xf32> -> vector<32x8xf32>
    %c0_3 = arith.constant 0 : index
    %c0_4 = arith.constant 0 : index
    %3 = vector.load %arg0[%c0_3, %c0_4] : memref<2x32xf32, #tpu.memory_space<vmem>>, vector<2x32xf32>
    %cst_5 = arith.constant dense<0.000000e+00> : vector<2x8xf32>
    %4 = tpu.matmul %3, %2, %cst_5 {dimension_numbers = #tpu.dot_dimension_numbers<[1], [0], [0], [1], [0, 0, 1, 1], [], []>} : vector<2x32xf32>, vector<32x8xf32>, vector<2x8xf32> -> vector<2x8xf32>
    %c0_6 = arith.constant 0 : index
    %c0_7 = arith.constant 0 : index
    %5 = vector.load %arg4[%c0_6, %c0_7] : memref<2x8xf32, #tpu.memory_space<vmem>>, vector<2x8xf32>
    tpu.vector_store %arg4[%c0_6, %c0_7], %4 {strides = array<i32>} : memref<2x8xf32, #tpu.memory_space<vmem>>, vector<2x8xf32>,
    %cst_8 = arith.constant dense<0xFF800000> : vector<2xf32>
    %6 = vector.multi_reduction <maximumf>, %4, %cst_8 [1] : vector<2x8xf32> to vector<2xf32>
    %7 = vector.shape_cast %6 : vector<2xf32> to vector<2x1xf32>
    %8 = vector.broadcast %7 : vector<2x1xf32> to vector<2x8xf32>
    %9 = arith.subf %4, %8 : vector<2x8xf32>
    %10 = math.exp %9 : vector<2x8xf32>
    %cst_9 = arith.constant dense<0.000000e+00> : vector<2xf32>
    %11 = vector.multi_reduction <add>, %10, %cst_9 [1] : vector<2x8xf32> to vector<2xf32>
    %12 = vector.shape_cast %11 : vector<2xf32> to vector<2x1xf32>
    %13 = vector.broadcast %12 : vector<2x1xf32> to vector<2x8xf32>
    %14 = arith.divf %10, %13 : vector<2x8xf32>
    %c0_10 = arith.constant 0 : index
    %c0_11 = arith.constant 0 : index
    %15 = vector.load %arg3[%c0_10, %c0_11] : memref<2x8xf32, #tpu.memory_space<vmem>>, vector<2x8xf32>
    tpu.vector_store %arg3[%c0_10, %c0_11], %14 {strides = array<i32>} : memref<2x8xf32, #tpu.memory_space<vmem>>, vector<2x8xf32>,
    return
  }
}

</mosaic_0001>

<bundles_post_ra>
// kernel: tpu_custom_call.1
= control target key start
LH: loop header
LB: loop body
LE: loop exit
PB: predicated region body
PF: predicated region fallthrough
CT: control target
= control target key end

     0   :  { %10 = vsyncpa [#allocation3], 0  ;;  %vm28_vm0 = vcmask 392192   ;;  %s420_s0 = inlined_call_operand.vmem [shape: f32[2,32], index: 0, kind: input, shape index: {}]   ;;  %s421_s1 = inlined_call_operand.vmem [shape: f32[48,8], index: 1, kind: input, shape index: {}]   ;;  %s422_s2 = inlined_call_operand.vmem [shape: f32[32,48], index: 2, kind: input, shape index: {}]   ;;  %s423_s3 = inlined_call_operand.hbm [shape: f32[2,8], index: 3, kind: output, shape index: {0}]   ;;  %s424_s4 = inlined_call_operand.hbm [shape: f32[2,8], index: 4, kind: output, shape index: {1}]  }
   0x1   :  { %v27_v0 = vld [vmem:[%s421_s1 + $0x28] sm:$0xff]  ;;  %v26_v1 = vld [vmem:[%s421_s1 + $0x20] sm:$0xff]  ;;  %v25_v2 = vld [vmem:[%s421_s1 + $0x18] sm:$0xff] }
   0x2   :  { %263 = vmatprep.subr.mxu0 %v27_v0  ;;  %v18_v3 = vld [vmem:[%s422_s2] sm:$0xff] }
   0x3   :  { %264 = vmatpush3.msra.mxu0 %v27_v0  ;;  %275 = vmatprep.mubr.msk.f32.mxu0 %vm28_vm0, %v18_v3 }
   0x4   :  { %265 = vmatprep.subr.mxu0 %v26_v1 }
   0x5   :  { %11 = vsyncpa [#allocation5], 0  ;;  %266 = vmatpush3.msra.mxu0 %v26_v1  ;;  %v24_v4 = vld [vmem:[%s421_s1 + $0x10] sm:$0xff]  ;;  %v23_v5 = vld [vmem:[%s421_s1 + $0x8] sm:$0xff]  ;;  %v344_v10 = vmov 0.0   ;;  %vm345_vm1 = vmmov 0  }
   0x6   :  { %267 = vmatprep.subr.mxu0 %v25_v2  ;;  %v22_v6 = vld [vmem:[%s421_s1] sm:$0xff]  ;;  %v19_v7 = vld [vmem:[%s422_s2 + $0x8] sm:$0xff]  ;;  %v20_v8 = vld [vmem:[%s422_s2 + $0x10] sm:$0xff]  ;;  %281 = vmatprep.subr.mxu1 %v344_v10  ;;  %vm127_vm2 = vcmask 261120   ;;  %vm201_vm3 = vcmask 58368  }
   0x7   :  { %268 = vmatpush3.msra.mxu0 %v25_v2  ;;  %v21_v9 = vld [vmem:[%s422_s2 + $0x18] sm:$0xff]  ;;  %289 = vmatprep.mubr.msk.f32.mxu1 %vm345_vm1, %v344_v10  ;;  %v126_v15 = vld [vmem:[%s420_s0] sm:$0x3]  ;;  %s346_s0 = smov [#allocation4]  }
   0x8   :  { %269 = vmatprep.subr.mxu0 %v24_v4  ;;  %s231_s2 = sshll.u32 %s346_s0, 4  ;;  %s232_s2 = int_to_ptr.vmem [resolvable:$true] %s231_s2 }
   0x9   :  { %270 = vmatpush3.msra.mxu0 %v24_v4  ;;  %s300_s10 = scalar_lea.vmem %s232_s2, 32  ;;  %p305_p1 = scmp.lt.s32.totalorder %s232_s2, %s232_s2 }
   0xa   :  { %271 = vmatprep.subr.mxu0 %v23_v5  ;;  %p301_p0 = scmp.ne.s32.totalorder %s232_s2, %s300_s10  ;;  %p306_p2 = scmp.lt.s32.totalorder %s300_s10, %s300_s10 }
   0xb   :  { %272 = vmatpush3.msra.mxu0 %v23_v5 }
   0xc   :  { %273 = vmatprep.subr.mxu0 %v22_v6  ;;  %p307_p3 = por %p306_p2, %p305_p1 }
   0xd   :  { %274 = vmatpush3.msra.mxu0 %v22_v6 }
   0xe   :  { %276 = vmatmul.mubr.msk.f32.vlgmr.msra.gmra.mxu0 %vm28_vm0, %v19_v7  ;;  %p308_p4 = pnand %p307_p3, %p301_p0 }
   0xf   :  { %278 = vmatprep.mubr.msk.f32.mxu0 %vm28_vm0, %v20_v8 }
  0x12   :  { %279 = vmatmul.mubr.msk.f32.gmra.mxu0 %vm28_vm0, %v21_v9 }
  0xce   :  { %v277_v11 = vpop.f32.mrf.mxu0 }
  0xd0   :  { %v107_v12 = vpop.f32.mrf.mxu0 }
  0xd2   :  { %v280_v13 = vpop.f32.mrf.mxu0 }
  0xd3   :  { %282 = vmatpush3.msra.mxu1 %v280_v13 }
  0xd4   :  { %v117_v14 = vpop.f32.mrf.mxu0  ;;  %283 = vmatprep.subr.mxu1 %v344_v10 }
  0xd5   :  { %284 = vmatpush3.msra.mxu1 %v117_v14 }
  0xd6   :  { %285 = vmatprep.subr.mxu1 %v344_v10 }
  0xd7   :  { %286 = vmatpush3.msra.mxu1 %v277_v11 }
  0xd8   :  { %287 = vmatprep.subr.mxu1 %v344_v10 }
  0xd9   :  { %288 = vmatpush3.msra.mxu1 %v107_v12 }
  0xda   :  { %290 = vmatmul.mubr.msk.f32.vlgmr.msra.gmra.mxu1 %vm127_vm2, %v126_v15 }
 0x19a   :  { %v197_v16 = vpop.f32.mrf.mxu1 }
 0x19b   :  { %v203_v17 = vsel %vm201_vm3, %v197_v16, -inf  ;;  %202 = vst.msk [vmem:[#allocation4] sm:$0x3] %vm201_vm3, %v197_v16 }
 0x19c   :  { %204 = vmax.xlane.f32.xlu0 %v203_v17  ;;  %v291_v18 = vpop.f32.mrf.mxu1 }
 0x225   :  { %v205_v19 = vpop.xlane.xlu0 %204 }
 0x226   :  { %v206_v20 = vsub.f32 %v197_v16, %v205_v19 }
 0x228   :  { %v207_v21 = vmul.f32 1.442695, %v206_v20 }
 0x22a   :  { %296 = vpow2.f32 %v207_v21 }
 0x237   :  { %v297_v22 = vpop.eup %296 }
 0x238   :  { %v209_v23 = vsel %vm201_vm3, %v297_v22, 0.0 }
 0x239   :  { %210 = vadd.xlane.f32.xlu0 %v209_v23 }
 0x23a   :  { %311 = shalt.err (!%p308_p4)
}
 0x23b   :  { %234 = dma.vmem_to_hbm [thread:$0]  %s232_s2, 32, %s424_s4, [#allocation5]  }
 0x23c   :  { %s347_s13 = smov [#allocation2]  }
 0x23d   :  { %s221_s14 = sshll.u32 %s347_s13, 4  ;;  %s222_s14 = int_to_ptr.vmem [resolvable:$true] %s221_s14 }
 0x23e   :  { %s320_s15 = scalar_lea.vmem %s222_s14, 32  ;;  %p325_p6 = scmp.lt.s32.totalorder %s222_s14, %s222_s14 }
 0x23f   :  { %p321_p5 = scmp.ne.s32.totalorder %s222_s14, %s320_s15  ;;  %p326_p7 = scmp.lt.s32.totalorder %s320_s15, %s320_s15 }
 0x241   :  { %p327_p8 = por %p326_p7, %p325_p6 }
 0x243   :  { %p328_p9 = pnand %p327_p8, %p321_p5 }
 0x2c2   :  { %v211_v24 = vpop.xlane.xlu0 %210 }
 0x2c3   :  { %298 = vrcp.f32 %v211_v24 }
 0x2d0   :  { %v299_v25 = vpop.eup %298 }
 0x2d1   :  { %v213_v26 = vmul.f32 %v299_v25, %v297_v22 }
 0x2d3   :  { %214 = vst.msk [vmem:[#allocation2] sm:$0x3] %vm201_vm3, %v213_v26 }
 0x2d4   :  { %331 = shalt.err (!%p328_p9)
}
 0x2d5   :  { %224 = dma.vmem_to_hbm [thread:$0]  %s222_s14, 32, %s423_s3, [#allocation3]  }
 0x2d6   :  { %340 = dma.done.wait [#allocation3], 32  }
 0x2d7   :  { %341 = vsyncadd [#allocation3], 4294967264 }
 0x2d8   :  { %342 = dma.done.wait [#allocation5], 32  }
 0x2d9   :  { %343 = vsyncadd [#allocation5], 4294967264 }
 0x2da   :  { %241 = vsyncpa [#allocation3], 1 }
 0x2db   :  { %242 = vsyncpa [#allocation5], 1 }

</bundles_post_ra>
